<compile_context>
chip_gen: v7x
topology: tpu7x:2x2x1
jax: 0.10.0
libtpu: 0.0.40
codegen_flags: <defaults>
</compile_context>

<pallas_src>
import functools

import jax
import jax.numpy as jnp
from jax import lax
from jax.experimental import pallas as pl
from jax.experimental.pallas import tpu as pltpu


# Contract the last dim of both operands (q @ k^T without an explicit
# transpose) -- same dimension numbers the reference flash kernels use.
_NT_DIMS = (((1,), (1,)), ((), ()))


def _mha_kernel(x_ref, wq_ref, bq_ref, wk_ref, bk_ref, wv_ref, bv_ref,
                wo_ref, bo_ref, o_ref, k_cache, v_cache, acc_ref, *, q_tile):
    """Grid = (batch, query_tile, head).  One step: one head x one query tile."""
    qt = pl.program_id(1)
    h = pl.program_id(2)
    num_heads = pl.num_programs(2)

    wq = wq_ref[0]          # (E, D) bf16, softmax scale already folded in
    wk = wk_ref[0]          # (E, D) bf16
    wv = wv_ref[0]          # (E, D) bf16
    wo = wo_ref[0]          # (D, E) bf16

    # ---- per-(batch, head) K/V projection, cached across query tiles -------
    @pl.when(qt == 0)
    def _():
        x_full = x_ref[0]                                            # (N, E) bf16
        k_h = jnp.dot(x_full, wk, preferred_element_type=jnp.float32) + bk_ref[0]
        v_h = jnp.dot(x_full, wv, preferred_element_type=jnp.float32) + bv_ref[0]
        k_cache[h] = k_h.astype(k_cache.dtype)                       # (N, D) bf16
        v_cache[h] = v_h.astype(v_cache.dtype)

    kh = k_cache[h]                                                  # (N, D) bf16
    vh = v_cache[h]                                                  # (N, D) bf16

    # ---- Q projection for this query tile ----------------------------------
    q_start = pl.multiple_of(qt * q_tile, q_tile)
    xq = x_ref[0, pl.ds(q_start, q_tile), :]                         # (TQ, E) bf16
    qh = jnp.dot(xq, wq, preferred_element_type=jnp.float32) + bq_ref[0]
    qh = qh.astype(jnp.bfloat16)                                     # (TQ, D)

    # ---- attention: energy, softmax (f32 stats), PV -------------------------
    energy = lax.dot_general(qh, kh, _NT_DIMS,
                             preferred_element_type=jnp.float32)     # (TQ, N) f32
    m = jnp.max(energy, axis=-1, keepdims=True)
    e = jnp.exp(energy - m)
    s = jnp.sum(e, axis=-1, keepdims=True)
    att = (e * pl.reciprocal(s, approx=True)).astype(jnp.bfloat16)   # (TQ, N)
    # TODO(synk): attention dropout omitted (eval-mode identity); mask=None only.

    out_h = jnp.dot(att, vh, preferred_element_type=jnp.float32)     # (TQ, D) f32

    # ---- output projection, accumulated over heads (no concat) --------------
    @pl.when(h == 0)
    def _():
        acc_ref[...] = jnp.zeros_like(acc_ref)

    acc_ref[...] += jnp.dot(out_h.astype(jnp.bfloat16), wo,
                            preferred_element_type=jnp.float32)      # (TQ, E)

    @pl.when(h == num_heads - 1)
    def _():
        o_ref[0] = (acc_ref[...] + bo_ref[...]).astype(o_ref.dtype)


def prepare_params(params, num_heads):
    """One-time host-side prep: transpose torch (out,in) weights to (in,out),
    split per head along a leading axis, fold the 1/sqrt(E) softmax scale into
    the Q projection, and cast MXU inputs to bf16 (biases stay f32)."""
    E = params["wq"].shape[0]
    D = E // num_heads
    inv_scale = 1.0 / (E ** 0.5)          # Conformer scales by sqrt(emb_size)

    def per_head_w(w, scale=1.0):         # (out=E, in=E) -> (H, E_in, D)
        wt = (w.T * scale).reshape(E, num_heads, D)
        return jnp.transpose(wt, (1, 0, 2)).astype(jnp.bfloat16)

    def per_head_b(b, scale=1.0):         # (E,) -> (H, 1, D) f32
        return (b * scale).reshape(num_heads, 1, D).astype(jnp.float32)

    return {
        "wq": per_head_w(params["wq"], inv_scale),
        "bq": per_head_b(params["bq"], inv_scale),
        "wk": per_head_w(params["wk"]),
        "bk": per_head_b(params["bk"]),
        "wv": per_head_w(params["wv"]),
        "bv": per_head_b(params["bv"]),
        # torch (E_out, E_in) -> (E_in, E_out); E_in = h*D + d -> (H, D, E)
        "wo": params["wo"].T.reshape(num_heads, D, E).astype(jnp.bfloat16),
        "bo": params["bo"].reshape(1, E).astype(jnp.float32),
    }


def multi_head_attention(x, prepared, *, num_heads, q_tile=None):
    """x: (B, N, E) float32.  prepared: output of prepare_params()."""
    B, N, E = x.shape
    D = E // num_heads
    assert E == num_heads * D

    if q_tile is None:
        q_tile = N if N <= 128 else 128
    assert N % q_tile == 0 and (q_tile == N or q_tile % 8 == 0)
    num_q_tiles = N // q_tile

    p = prepared
    x_bf = x.astype(jnp.bfloat16)   # bf16 MXU inputs; f32 accumulation in-kernel

    kernel = functools.partial(_mha_kernel, q_tile=q_tile)

    def head_spec(last2):
        return pl.BlockSpec((1,) + last2, lambda b, q, h: (h, 0, 0))

    # Advisory cost estimate for XLA scheduling around the custom call.
    flops = B * (8 * N * E * E + 4 * N * N * E)
    transcendentals = B * num_heads * N * N
    bytes_accessed = (B * N * E * 2          # x (bf16 in)
                      + B * N * E * 4        # output (f32)
                      + 4 * E * E * 2        # weights (bf16)
                      + 4 * E * 4)           # biases (f32)

    return pl.pallas_call(
        kernel,
        out_shape=jax.ShapeDtypeStruct((B, N, E), x.dtype),
        grid_spec=pltpu.PrefetchScalarGridSpec(
            num_scalar_prefetch=0,
            grid=(B, num_q_tiles, num_heads),
            in_specs=[
                # Full sequence per batch; block index is constant across the
                # q-tile/head axes so it stays resident (no re-DMA).
                pl.BlockSpec((1, N, E), lambda b, q, h: (b, 0, 0)),
                head_spec((E, D)),                              # Wq (scaled)
                head_spec((1, D)),                              # bq (scaled)
                head_spec((E, D)),                              # Wk
                head_spec((1, D)),                              # bk
                head_spec((E, D)),                              # Wv
                head_spec((1, D)),                              # bv
                head_spec((D, E)),                              # Wo per head
                pl.BlockSpec((1, E), lambda b, q, h: (0, 0)),   # bo
            ],
            out_specs=pl.BlockSpec((1, q_tile, E), lambda b, q, h: (b, q, 0)),
            scratch_shapes=[
                pltpu.VMEM((num_heads, N, D), jnp.bfloat16),    # K cache
                pltpu.VMEM((num_heads, N, D), jnp.bfloat16),    # V cache
                pltpu.VMEM((q_tile, E), jnp.float32),           # out-proj accumulator
            ],
        ),
        # Head axis accumulates into the output tile and the K/V cache is
        # filled at q-tile 0, so those two axes must stay "arbitrary"; batch is
        # "parallel" (megacore).  (Recomputing K/V per q-tile would allow a
        # second parallel axis on v7x at the cost of redundant projections.)
        # For large N/E, also raise vmem_limit_bytes via pltpu.CompilerParams.
        compiler_params=pltpu.CompilerParams(
            dimension_semantics=("parallel", "arbitrary", "arbitrary")),
        cost_estimate=pl.CostEstimate(
            flops=flops, transcendentals=transcendentals,
            bytes_accessed=bytes_accessed),
    )(x_bf, p["wq"], p["bq"], p["wk"], p["bk"], p["wv"], p["bv"],
      p["wo"], p["bo"])


def _reference(x, params, num_heads):
    """Pure-JAX f32 reference mirroring the PyTorch forward (eval, mask=None)."""
    B, N, E = x.shape
    D = E // num_heads

    def lin(a, w, b):  # torch Linear: a @ W.T + b
        return a @ w.T + b

    q = lin(x, params["wq"], params["bq"]).reshape(B, N, num_heads, D).transpose(0, 2, 1, 3)
    k = lin(x, params["wk"], params["bk"]).reshape(B, N, num_heads, D).transpose(0, 2, 1, 3)
    v = lin(x, params["wv"], params["bv"]).reshape(B, N, num_heads, D).transpose(0, 2, 1, 3)
    energy = jnp.einsum("bhqd,bhkd->bhqk", q, k)
    att = jax.nn.softmax(energy / (E ** 0.5), axis=-1)
    out = jnp.einsum("bhal,bhlv->bhav", att, v)
    out = out.transpose(0, 2, 1, 3).reshape(B, N, E)
    return lin(out, params["wo"], params["bo"])


if __name__ == "__main__":
    B, N, E, H = 2, 16, 32, 4   # batch, seq, emb_size, num_heads

    key = jax.random.PRNGKey(0)
    ks = jax.random.split(key, 9)
    x = jax.random.normal(ks[0], (B, N, E), dtype=jnp.float32)

    scale = 1.0 / (E ** 0.5)
    params = {
        "wq": jax.random.uniform(ks[1], (E, E), jnp.float32, -scale, scale),
        "bq": jax.random.uniform(ks[2], (E,), jnp.float32, -scale, scale),
        "wk": jax.random.uniform(ks[3], (E, E), jnp.float32, -scale, scale),
        "bk": jax.random.uniform(ks[4], (E,), jnp.float32, -scale, scale),
        "wv": jax.random.uniform(ks[5], (E, E), jnp.float32, -scale, scale),
        "bv": jax.random.uniform(ks[6], (E,), jnp.float32, -scale, scale),
        "wo": jax.random.uniform(ks[7], (E, E), jnp.float32, -scale, scale),
        "bo": jax.random.uniform(ks[8], (E,), jnp.float32, -scale, scale),
    }

    prepared = prepare_params(params, num_heads=H)   # one-time host-side prep

    # q_tile=8 -> 2 query tiles per batch, exercising the K/V cache reuse path.
    out = multi_head_attention(x, prepared, num_heads=H, q_tile=8)
    out = jax.block_until_ready(out)

    ref = _reference(x, params, H)
    assert out.shape == (B, N, E)
    max_err = float(jnp.max(jnp.abs(out - ref)))
    # bf16 matmul inputs (f32 accumulation) -> looser tolerance vs f32 reference.
    assert jnp.allclose(out, ref, atol=2e-2, rtol=2e-2), (
        f"mismatch vs reference (max abs err {max_err})")

    print("KERNEL_OK")
</pallas_src>

<mosaic_0001>
module attributes {stable_mosaic.version = 11 : i64} {
  func.func @_mha_kernel(%arg0: i32, %arg1: i32, %arg2: i32, %arg3: memref<1x16x32xbf16, #tpu.memory_space<vmem>>, %arg4: memref<1x32x8xbf16, #tpu.memory_space<vmem>>, %arg5: memref<1x1x8xf32, #tpu.memory_space<vmem>>, %arg6: memref<1x32x8xbf16, #tpu.memory_space<vmem>>, %arg7: memref<1x1x8xf32, #tpu.memory_space<vmem>>, %arg8: memref<1x32x8xbf16, #tpu.memory_space<vmem>>, %arg9: memref<1x1x8xf32, #tpu.memory_space<vmem>>, %arg10: memref<1x8x32xbf16, #tpu.memory_space<vmem>>, %arg11: memref<1x32xf32, #tpu.memory_space<vmem>>, %arg12: memref<1x8x32xf32, #tpu.memory_space<vmem>>, %arg13: memref<4x16x8xbf16, #tpu.memory_space<vmem>>, %arg14: memref<4x16x8xbf16, #tpu.memory_space<vmem>>, %arg15: memref<8x32xf32, #tpu.memory_space<vmem>>) attributes {dimension_semantics = [#tpu.dimension_semantics<parallel>, #tpu.dimension_semantics<arbitrary>, #tpu.dimension_semantics<arbitrary>], iteration_bounds = array<i64: 2, 2, 4>, scalar_prefetch = 0 : i64, scratch_operands = 3 : i64, tpu.core_type = #tpu.core_type<tc>, window_params = [{transform_indices = @transform_0, window_bounds = array<i64: 1, 16, 32>}, {transform_indices = @transform_1, window_bounds = array<i64: 1, 32, 8>}, {transform_indices = @transform_2, window_bounds = array<i64: 1, 1, 8>}, {transform_indices = @transform_3, window_bounds = array<i64: 1, 32, 8>}, {transform_indices = @transform_4, window_bounds = array<i64: 1, 1, 8>}, {transform_indices = @transform_5, window_bounds = array<i64: 1, 32, 8>}, {transform_indices = @transform_6, window_bounds = array<i64: 1, 1, 8>}, {transform_indices = @transform_7, window_bounds = array<i64: 1, 8, 32>}, {pipeline_mode = #tpu.pipeline_mode<synchronous>, transform_indices = @transform_8, window_bounds = array<i64: 1, 32>}, {transform_indices = @transform_9, window_bounds = array<i64: 1, 8, 32>}]} {
    %c0 = arith.constant 0 : index
    %c0_0 = arith.constant 0 : index
    %c0_1 = arith.constant 0 : index
    %0 = vector.load %arg4[%c0, %c0_0, %c0_1] : memref<1x32x8xbf16, #tpu.memory_space<vmem>>, vector<1x32x8xbf16>
    %1 = vector.shape_cast %0 : vector<1x32x8xbf16> to vector<32x8xbf16>
    %c0_2 = arith.constant 0 : index
    %c0_3 = arith.constant 0 : index
    %c0_4 = arith.constant 0 : index
    %2 = vector.load %arg6[%c0_2, %c0_3, %c0_4] : memref<1x32x8xbf16, #tpu.memory_space<vmem>>, vector<1x32x8xbf16>
    %3 = vector.shape_cast %2 : vector<1x32x8xbf16> to vector<32x8xbf16>
    %c0_5 = arith.constant 0 : index
    %c0_6 = arith.constant 0 : index
    %c0_7 = arith.constant 0 : index
    %4 = vector.load %arg8[%c0_5, %c0_6, %c0_7] : memref<1x32x8xbf16, #tpu.memory_space<vmem>>, vector<1x32x8xbf16>
    %5 = vector.shape_cast %4 : vector<1x32x8xbf16> to vector<32x8xbf16>
    %c0_8 = arith.constant 0 : index
    %c0_9 = arith.constant 0 : index
    %c0_10 = arith.constant 0 : index
    %6 = vector.load %arg10[%c0_8, %c0_9, %c0_10] : memref<1x8x32xbf16, #tpu.memory_space<vmem>>, vector<1x8x32xbf16>
    %7 = vector.shape_cast %6 : vector<1x8x32xbf16> to vector<8x32xbf16>
    %c0_i32 = arith.constant 0 : i32
    %8 = arith.cmpi eq, %arg1, %c0_i32 : i32
    %9 = arith.extui %8 : i1 to i32
    %c0_i32_11 = arith.constant 0 : i32
    %10 = arith.cmpi ne, %9, %c0_i32_11 : i32
    scf.if %10 {
      %c0_33 = arith.constant 0 : index
      %c0_34 = arith.constant 0 : index
      %c0_35 = arith.constant 0 : index
      %52 = vector.load %arg3[%c0_33, %c0_34, %c0_35] : memref<1x16x32xbf16, #tpu.memory_space<vmem>>, vector<1x16x32xbf16>
      %53 = vector.shape_cast %52 : vector<1x16x32xbf16> to vector<16x32xbf16>
      %cst_36 = arith.constant dense<0.000000e+00> : vector<16x8xf32>
      %54 = tpu.matmul %53, %3, %cst_36 {dimension_numbers = #tpu.dot_dimension_numbers<[1], [0], [0], [1], [0, 0, 1, 1], [], []>} : vector<16x32xbf16>, vector<32x8xbf16>, vector<16x8xf32> -> vector<16x8xf32>
      %c0_37 = arith.constant 0 : index
      %c0_38 = arith.constant 0 : index
      %c0_39 = arith.constant 0 : index
      %55 = vector.load %arg7[%c0_37, %c0_38, %c0_39] : memref<1x1x8xf32, #tpu.memory_space<vmem>>, vector<1x1x8xf32>
      %56 = vector.shape_cast %55 : vector<1x1x8xf32> to vector<1x8xf32>
      %57 = vector.broadcast %56 : vector<1x8xf32> to vector<16x8xf32>
      %58 = arith.addf %54, %57 : vector<16x8xf32>
      %cst_40 = arith.constant dense<0.000000e+00> : vector<16x8xf32>
      %59 = tpu.matmul %53, %5, %cst_40 {dimension_numbers = #tpu.dot_dimension_numbers<[1], [0], [0], [1], [0, 0, 1, 1], [], []>} : vector<16x32xbf16>, vector<32x8xbf16>, vector<16x8xf32> -> vector<16x8xf32>
      %c0_41 = arith.constant 0 : index
      %c0_42 = arith.constant 0 : index
      %c0_43 = arith.constant 0 : index
      %60 = vector.load %arg9[%c0_41, %c0_42, %c0_43] : memref<1x1x8xf32, #tpu.memory_space<vmem>>, vector<1x1x8xf32>
      %61 = vector.shape_cast %60 : vector<1x1x8xf32> to vector<1x8xf32>
      %62 = vector.broadcast %61 : vector<1x8xf32> to vector<16x8xf32>
      %63 = arith.addf %59, %62 : vector<16x8xf32>
      %64 = arith.truncf %58 : vector<16x8xf32> to vector<16x8xbf16>
      %65 = arith.index_cast %arg2 : i32 to index
      %c0_44 = arith.constant 0 : index
      %c0_45 = arith.constant 0 : index
      %66 = vector.load %arg13[%65, %c0_44, %c0_45] : memref<4x16x8xbf16, #tpu.memory_space<vmem>>, vector<1x16x8xbf16>
      %67 = vector.shape_cast %66 : vector<1x16x8xbf16> to vector<16x8xbf16>
      %68 = vector.shape_cast %64 : vector<16x8xbf16> to vector<1x16x8xbf16>
      tpu.vector_store %arg13[%65, %c0_44, %c0_45], %68 {strides = array<i32>} : memref<4x16x8xbf16, #tpu.memory_space<vmem>>, vector<1x16x8xbf16>,
      %69 = arith.truncf %63 : vector<16x8xf32> to vector<16x8xbf16>
      %70 = arith.index_cast %arg2 : i32 to index
      %c0_46 = arith.constant 0 : index
      %c0_47 = arith.constant 0 : index
      %71 = vector.load %arg14[%70, %c0_46, %c0_47] : memref<4x16x8xbf16, #tpu.memory_space<vmem>>, vector<1x16x8xbf16>
      %72 = vector.shape_cast %71 : vector<1x16x8xbf16> to vector<16x8xbf16>
      %73 = vector.shape_cast %69 : vector<16x8xbf16> to vector<1x16x8xbf16>
      tpu.vector_store %arg14[%70, %c0_46, %c0_47], %73 {strides = array<i32>} : memref<4x16x8xbf16, #tpu.memory_space<vmem>>, vector<1x16x8xbf16>,
    } else {
    }
    %11 = arith.index_cast %arg2 : i32 to index
    %c0_12 = arith.constant 0 : index
    %c0_13 = arith.constant 0 : index
    %12 = vector.load %arg13[%11, %c0_12, %c0_13] : memref<4x16x8xbf16, #tpu.memory_space<vmem>>, vector<1x16x8xbf16>
    %13 = vector.shape_cast %12 : vector<1x16x8xbf16> to vector<16x8xbf16>
    %14 = arith.index_cast %arg2 : i32 to index
    %c0_14 = arith.constant 0 : index
    %c0_15 = arith.constant 0 : index
    %15 = vector.load %arg14[%14, %c0_14, %c0_15] : memref<4x16x8xbf16, #tpu.memory_space<vmem>>, vector<1x16x8xbf16>
    %16 = vector.shape_cast %15 : vector<1x16x8xbf16> to vector<16x8xbf16>
    %c8_i32 = arith.constant 8 : i32
    %17 = arith.muli %arg1, %c8_i32 : i32
    %18 = tpu.assume_multiple %17, 8 : i32
    %c0_16 = arith.constant 0 : index
    %19 = arith.index_cast %18 : i32 to index
    %c0_17 = arith.constant 0 : index
    %20 = vector.load %arg3[%c0_16, %19, %c0_17] : memref<1x16x32xbf16, #tpu.memory_space<vmem>>, vector<1x8x32xbf16>
    %21 = vector.shape_cast %20 : vector<1x8x32xbf16> to vector<8x32xbf16>
    %cst = arith.constant dense<0.000000e+00> : vector<8x8xf32>
    %22 = tpu.matmul %21, %1, %cst {dimension_numbers = #tpu.dot_dimension_numbers<[1], [0], [0], [1], [0, 0, 1, 1], [], []>} : vector<8x32xbf16>, vector<32x8xbf16>, vector<8x8xf32> -> vector<8x8xf32>
    %c0_18 = arith.constant 0 : index
    %c0_19 = arith.constant 0 : index
    %c0_20 = arith.constant 0 : index
    %23 = vector.load %arg5[%c0_18, %c0_19, %c0_20] : memref<1x1x8xf32, #tpu.memory_space<vmem>>, vector<1x1x8xf32>
    %24 = vector.shape_cast %23 : vector<1x1x8xf32> to vector<1x8xf32>
    %25 = vector.broadcast %24 : vector<1x8xf32> to vector<8x8xf32>
    %26 = arith.addf %22, %25 : vector<8x8xf32>
    %27 = arith.truncf %26 : vector<8x8xf32> to vector<8x8xbf16>
    %cst_21 = arith.constant dense<0.000000e+00> : vector<8x16xf32>
    %28 = tpu.matmul %27, %13, %cst_21 {dimension_numbers = #tpu.dot_dimension_numbers<[1], [1], [0], [0], [0, 0, 1, 0], [], []>} : vector<8x8xbf16>, vector<16x8xbf16>, vector<8x16xf32> -> vector<8x16xf32>
    %cst_22 = arith.constant dense<0xFF800000> : vector<8xf32>
    %29 = vector.multi_reduction <maximumf>, %28, %cst_22 [1] : vector<8x16xf32> to vector<8xf32>
    %30 = vector.shape_cast %29 : vector<8xf32> to vector<8x1xf32>
    %31 = vector.broadcast %30 : vector<8x1xf32> to vector<8x16xf32>
    %32 = arith.subf %28, %31 : vector<8x16xf32>
    %33 = math.exp %32 : vector<8x16xf32>
    %cst_23 = arith.constant dense<0.000000e+00> : vector<8xf32>
    %34 = vector.multi_reduction <add>, %33, %cst_23 [1] : vector<8x16xf32> to vector<8xf32>
    %35 = vector.shape_cast %34 : vector<8xf32> to vector<8x1xf32>
    %36 = tpu.reciprocal %35 {approx = true} : vector<8x1xf32> -> vector<8x1xf32>
    %37 = vector.broadcast %36 : vector<8x1xf32> to vector<8x16xf32>
    %38 = arith.mulf %33, %37 : vector<8x16xf32>
    %39 = arith.truncf %38 : vector<8x16xf32> to vector<8x16xbf16>
    %cst_24 = arith.constant dense<0.000000e+00> : vector<8x8xf32>
    %40 = tpu.matmul %39, %16, %cst_24 {dimension_numbers = #tpu.dot_dimension_numbers<[1], [0], [0], [1], [0, 0, 1, 1], [], []>} : vector<8x16xbf16>, vector<16x8xbf16>, vector<8x8xf32> -> vector<8x8xf32>
    %c0_i32_25 = arith.constant 0 : i32
    %41 = arith.cmpi eq, %arg2, %c0_i32_25 : i32
    %42 = arith.extui %41 : i1 to i32
    %c0_i32_26 = arith.constant 0 : i32
    %43 = arith.cmpi ne, %42, %c0_i32_26 : i32
    scf.if %43 {
      %cst_33 = arith.constant 0.000000e+00 : f32
      %52 = vector.broadcast %cst_33 : f32 to vector<8x32xf32>
      %c0_34 = arith.constant 0 : index
      %c0_35 = arith.constant 0 : index
      %53 = vector.load %arg15[%c0_34, %c0_35] : memref<8x32xf32, #tpu.memory_space<vmem>>, vector<8x32xf32>
      tpu.vector_store %arg15[%c0_34, %c0_35], %52 {strides = array<i32>} : memref<8x32xf32, #tpu.memory_space<vmem>>, vector<8x32xf32>,
    } else {
    }
    %c0_27 = arith.constant 0 : index
    %c0_28 = arith.constant 0 : index
    %44 = vector.load %arg15[%c0_27, %c0_28] : memref<8x32xf32, #tpu.memory_space<vmem>>, vector<8x32xf32>
    %45 = arith.truncf %40 : vector<8x8xf32> to vector<8x8xbf16>
    %cst_29 = arith.constant dense<0.000000e+00> : vector<8x32xf32>
    %46 = tpu.matmul %45, %7, %cst_29 {dimension_numbers = #tpu.dot_dimension_numbers<[1], [0], [0], [1], [0, 0, 1, 1], [], []>} : vector<8x8xbf16>, vector<8x32xbf16>, vector<8x32xf32> -> vector<8x32xf32>
    %47 = arith.addf %44, %46 : vector<8x32xf32>
    %c0_30 = arith.constant 0 : index
    %c0_31 = arith.constant 0 : index
    %48 = vector.load %arg15[%c0_30, %c0_31] : memref<8x32xf32, #tpu.memory_space<vmem>>, vector<8x32xf32>
    tpu.vector_store %arg15[%c0_30, %c0_31], %47 {strides = array<i32>} : memref<8x32xf32, #tpu.memory_space<vmem>>, vector<8x32xf32>,
    %c3_i32 = arith.constant 3 : i32
    %49 = arith.cmpi eq, %arg2, %c3_i32 : i32
    %50 = arith.extui %49 : i1 to i32
    %c0_i32_32 = arith.constant 0 : i32
    %51 = arith.cmpi ne, %50, %c0_i32_32 : i32
    scf.if %51 {
      %c0_33 = arith.constant 0 : index
      %c0_34 = arith.constant 0 : index
      %52 = vector.load %arg15[%c0_33, %c0_34] : memref<8x32xf32, #tpu.memory_space<vmem>>, vector<8x32xf32>
      %c0_35 = arith.constant 0 : index
      %c0_36 = arith.constant 0 : index
      %53 = vector.load %arg11[%c0_35, %c0_36] : memref<1x32xf32, #tpu.memory_space<vmem>>, vector<1x32xf32>
      %54 = vector.broadcast %53 : vector<1x32xf32> to vector<8x32xf32>
      %55 = arith.addf %52, %54 : vector<8x32xf32>
      %c0_37 = arith.constant 0 : index
      %c0_38 = arith.constant 0 : index
      %c0_39 = arith.constant 0 : index
      %56 = vector.load %arg12[%c0_37, %c0_38, %c0_39] : memref<1x8x32xf32, #tpu.memory_space<vmem>>, vector<1x8x32xf32>
      %57 = vector.shape_cast %56 : vector<1x8x32xf32> to vector<8x32xf32>
      %58 = vector.shape_cast %55 : vector<8x32xf32> to vector<1x8x32xf32>
      tpu.vector_store %arg12[%c0_37, %c0_38, %c0_39], %58 {strides = array<i32>} : memref<1x8x32xf32, #tpu.memory_space<vmem>>, vector<1x8x32xf32>,
    } else {
    }
    return
  }
  func.func @transform_0(%arg0: i32, %arg1: i32, %arg2: i32) -> (i32, i32, i32) {
    %c0_i32 = arith.constant 0 : i32
    %c0_i32_0 = arith.constant 0 : i32
    %c0_i32_1 = arith.constant 0 : i32
    return %arg0, %c0_i32, %c0_i32_0 : i32, i32, i32
  }
  func.func @transform_1(%arg0: i32, %arg1: i32, %arg2: i32) -> (i32, i32, i32) {
    %c0_i32 = arith.constant 0 : i32
    %c0_i32_0 = arith.constant 0 : i32
    %c0_i32_1 = arith.constant 0 : i32
    return %arg2, %c0_i32, %c0_i32_0 : i32, i32, i32
  }
  func.func @transform_2(%arg0: i32, %arg1: i32, %arg2: i32) -> (i32, i32, i32) {
    %c0_i32 = arith.constant 0 : i32
    %c0_i32_0 = arith.constant 0 : i32
    %c0_i32_1 = arith.constant 0 : i32
    return %arg2, %c0_i32, %c0_i32_0 : i32, i32, i32
  }
  func.func @transform_3(%arg0: i32, %arg1: i32, %arg2: i32) -> (i32, i32, i32) {
    %c0_i32 = arith.constant 0 : i32
    %c0_i32_0 = arith.constant 0 : i32
    %c0_i32_1 = arith.constant 0 : i32
    return %arg2, %c0_i32, %c0_i32_0 : i32, i32, i32
  }
  func.func @transform_4(%arg0: i32, %arg1: i32, %arg2: i32) -> (i32, i32, i32) {
    %c0_i32 = arith.constant 0 : i32
    %c0_i32_0 = arith.constant 0 : i32
    %c0_i32_1 = arith.constant 0 : i32
    return %arg2, %c0_i32, %c0_i32_0 : i32, i32, i32
  }
  func.func @transform_5(%arg0: i32, %arg1: i32, %arg2: i32) -> (i32, i32, i32) {
    %c0_i32 = arith.constant 0 : i32
    %c0_i32_0 = arith.constant 0 : i32
    %c0_i32_1 = arith.constant 0 : i32
    return %arg2, %c0_i32, %c0_i32_0 : i32, i32, i32
  }
  func.func @transform_6(%arg0: i32, %arg1: i32, %arg2: i32) -> (i32, i32, i32) {
    %c0_i32 = arith.constant 0 : i32
    %c0_i32_0 = arith.constant 0 : i32
    %c0_i32_1 = arith.constant 0 : i32
    return %arg2, %c0_i32, %c0_i32_0 : i32, i32, i32
  }
  func.func @transform_7(%arg0: i32, %arg1: i32, %arg2: i32) -> (i32, i32, i32) {
    %c0_i32 = arith.constant 0 : i32
    %c0_i32_0 = arith.constant 0 : i32
    %c0_i32_1 = arith.constant 0 : i32
    return %arg2, %c0_i32, %c0_i32_0 : i32, i32, i32
  }
  func.func @transform_8(%arg0: i32, %arg1: i32, %arg2: i32) -> (i32, i32) {
    %c0_i32 = arith.constant 0 : i32
    %c0_i32_0 = arith.constant 0 : i32
    %c0_i32_1 = arith.constant 0 : i32
    return %c0_i32, %c0_i32_0 : i32, i32
  }
  func.func @transform_9(%arg0: i32, %arg1: i32, %arg2: i32) -> (i32, i32, i32) {
    %c0_i32 = arith.constant 0 : i32
    %c0_i32_0 = arith.constant 0 : i32
    return %arg0, %arg1, %c0_i32 : i32, i32, i32
  }
}

</mosaic_0001>

<bundles_post_ra>
// kernel: tpu_custom_call.1
= control target key start
LH: loop header
LB: loop body
LE: loop exit
PB: predicated region body
PF: predicated region fallthrough
CT: control target
= control target key end

     0   :  { %s1688_s0 = inlined_call_operand.vmem [shape: bf16[2,16,32], index: 0, kind: input, shape index: {}]   ;;  %s1689_s1 = inlined_call_operand.vmem [shape: bf16[4,32,8], index: 1, kind: input, shape index: {}]   ;;  %s1690_s2 = inlined_call_operand.vmem [shape: f32[4,1,8], index: 2, kind: input, shape index: {}]   ;;  %s1691_s3 = inlined_call_operand.vmem [shape: bf16[4,32,8], index: 3, kind: input, shape index: {}]   ;;  %s1692_s4 = inlined_call_operand.vmem [shape: f32[4,1,8], index: 4, kind: input, shape index: {}]   ;;  %s1693_s5 = inlined_call_operand.vmem [shape: bf16[4,32,8], index: 5, kind: input, shape index: {}]   ;;  %s1694_s6 = inlined_call_operand.vmem [shape: f32[4,1,8], index: 6, kind: input, shape index: {}]   ;;  %s1695_s7 = inlined_call_operand.vmem [shape: bf16[4,8,32], index: 7, kind: input, shape index: {}]   ;;  %s1696_s8 = inlined_call_operand.vmem [shape: f32[1,32], index: 8, kind: input, shape index: {}]   ;;  %s1697_s9 = inlined_call_operand.hbm [shape: f32[2,16,32], index: 9, kind: output, shape index: {}]  }
   0x1   :  { %1713 = sst [smem:[#allocation21_spill]] %s1697_s9 }
   0x2   :  { %14 = vsyncpa [#allocation6], 0 }
   0x3   :  { %16 = vsyncpa [#allocation6 + $0x1], 0  ;;  %s1429_s30 = smov 0   ;;  %s1431_s10 = smov 0  }
   0x4   :  { %s1433_s11 = smov 0   ;;  %s1435_s12 = smov 0  }
   0x5   :  { %s1437_s13 = smov 0   ;;  %s1439_s14 = smov 0  }
   0x6   :  { %s1441_s15 = smov 0   ;;  %s1443_s16 = smov 0  }
   0x7   :  { %s1445_s17 = smov 0   ;;  %s1447_s18 = smov 0  }
   0x8 LB: > { %1714 = sst [smem:[#allocation8_spill]] %s1335_s30  ;;  %s1057_s19 = sadd.s32 4294967295, %s1371_s18   ;;  %s1371_s18 = sphi %s1447_s18, %s22_s18   ;;  %s1367_s17 = sphi %s1445_s17, %s1744_s17   ;;  %s1363_s16 = sphi %s1443_s16, %s1743_s16   ;;  %s1359_s15 = sphi %s1441_s15, %s1742_s15   ;;  %s1355_s14 = sphi %s1439_s14, %s1741_s14   ;;  %s1351_s13 = sphi %s1437_s13, %s1740_s13   ;;  %s1347_s12 = sphi %s1435_s12, %s1739_s12   ;;  %s1343_s11 = sphi %s1433_s11, %s1738_s11   ;;  %s1339_s10 = sphi %s1431_s10, %s1737_s10   ;;  %s1335_s30 = sphi %s1429_s30, %s1736_s30  }
   0x9   : > { %1715 = sst [smem:[#allocation9_spill]] %s1339_s10  ;;  %s1058_s20 = sadd.s32 4294967294, %s1371_s18  }
   0xa   : > { %1716 = sst [smem:[#allocation10_spill]] %s1343_s11  ;;  %s34_s21 = sadd.s32 1, %s1359_s15 }
   0xb   : > { %1717 = sst [smem:[#allocation11_spill]] %s1359_s15  ;;  %p35_p0 = scmp.ge.s32.totalorder %s34_s21, 4 }
   0xc   : > { %1718 = sst [smem:[#allocation12_spill]] %s1363_s16  ;;  %s37_s22 = sadd.s32 1, %s1363_s16 }
   0xd   : > { %1719 = sst [smem:[#allocation13_spill]] %s1367_s17  ;;  %s41_s23 = sadd.s32 1, %s1367_s17 }
   0xe   : > { %1720 = sst [smem:[#allocation14_spill]] %s1371_s18  ;;  %p289_p1 = scmp.ne.s32.totalorder %s1343_s11, %s1339_s10 }
   0xf   : > { %s1746_s21 = smov (%p35_p0, %s34_s21), 0  ;;  %s1748_s22 = smov (!%p35_p0, %s37_s22), %s1363_s16 }
  0x10   : > { %1721 = sst [smem:[#allocation15_spill]] %s1746_s21  ;;  %p290_p2 = scmp.eq.s32.totalorder %s1057_s19, 15 }
  0x11   : > { %p295_p3 = scmp.ne.s32.totalorder %s1339_s10, %s1335_s30  ;;  %p39_p4 = scmp.ge.s32.totalorder %s1748_s22, 2 }
  0x12   : > { %p296_p5 = scmp.eq.s32.totalorder %s1058_s20, 15  ;;  %p1491_p6 = por %p290_p2, %p289_p1 }
  0x13   : > { %s1750_s22 = smov (%p39_p4, %s1748_s22), 0  ;;  %s1752_s23 = smov (!%p39_p4, %s41_s23), %s1367_s17 }
  0x14   : > { %s1722_s24 = scalar_select %p1491_p6, 1, 0 }
  0x15   : > { %1724 = sst [smem:[#allocation17_spill]] %s1750_s22  ;;  %p1498_p7 = por %p296_p5, %p295_p3 }
  0x16   : > { %1723 = sst [smem:[#allocation16_spill]] %s1722_s24  ;;  %p1061_p8 = scmp.ge.s32.totalorder %s1371_s18, 1 }
  0x17   : > { %s1725_s25 = scalar_select %p1498_p7, 1, 0 }
  0x18   : > { %p43_p9 = scmp.ge.s32.totalorder %s1752_s23, 2  ;;  %p374_p10 = scmp.lt.s32.totalorder %s1371_s18, 17 }
  0x19   : > { %1726 = sst [smem:[#allocation18_spill]] %s1725_s25  ;;  %s275_s26 = ssub.s32 %s1363_s16, %s1750_s22 }
  0x1a   : > { %s1754_s23 = smov (%p43_p9, %s1752_s23), 0  ;;  %p375_p11 = pnand %p1061_p8, %p374_p10 }
  0x1b   : > { %1727 = sst [smem:[#allocation19_spill]] %s1754_s23  ;;  %s274_s27 = ssub.s32 %s1367_s17, %s1754_s23 }
  0x1c   : > { %s276_s28 = sor.u32 %s275_s26, %s274_s27  ;;  %s279_s29 = sadd.s32 1, %s1343_s11 }
  0x1d   : > { %p277_p12 = scmp.eq.s32.totalorder %s276_s28, 0  ;;  %378 = sbr.rel (%p375_p11) target bundleno = 1497 (0x5d9), region = 56 }
  0x1e   : > { %s1703_s20 = sand.u32 (!%p375_p11), 1, %s1339_s10   ;;  %p438_p13 = scmp.lt.s32.totalorder (!%p375_p11), %s1355_s14, 1 }
  0x1f   : > { %s1512_s19 = scalar_select %p277_p12, %s1343_s11, %s279_s29  }
  0x20   : > { %s1518_s22 = sshll.u32 (!%p375_p11), %s1703_s20, 3  ;;  %p443_p0 = scmp.lt.s32.totalorder (!%p375_p11), %s1347_s12, 3 }
  0x21   : > { %1728 = sst [smem:[#allocation20_spill]] %s1512_s19  ;;  %p1072_p1 = scmp.ne.s32.totalorder (!%p375_p11), %s1351_s13, 0 }
  0x24   : > { %s439_s21 = scalar_select %p438_p13, %s1355_s14, 1 }
  0x25   : > { %s1523_s23 = scalar_select %p443_p0, %s1347_s12, 3 }
  0x26   : > { %s1103_s26 = sshll.u32 %s439_s21, 3  ;;  %v1373_v15 = vmov (!%p1072_p1), 0.0   ;;  %vm1374_vm0 = vmmov (!%p1072_p1), 0   ;;  %vm515_vm1 = vcmask (!%p1072_p1), 261120   ;;  %s1082_s16 = sshll.u32 (!%p1072_p1), %s1347_s12, 3  ;;  %vm623_vm2 = vcmask (!%p1072_p1), 64512  }
  0x27   : > { %s1528_s29 = scalar_lea.vmem %s1688_s0, %s1103_s26  ;;  %s1104_s17 = sshll.u32 %s1523_s23, 4  ;;  %1122 = vmatprep.subr.bf16.mxu0 (!%p1072_p1), %v1373_v15  ;;  %1130 = vmatprep.subr.bf16.mxu1 (!%p1072_p1), %v1373_v15 }
  0x28   : > { %s447_s20 = scalar_lea.vmem %s1689_s1, %s1104_s17  ;;  %s450_s25 = scalar_lea.vmem %s1690_s2, %s1523_s23  ;;  %1126 = vmatprep.mubr.msk.bf16.mxu0 (!%p1072_p1), %vm1374_vm0, %v1373_v15  ;;  %1134 = vmatprep.mubr.msk.bf16.mxu1 (!%p1072_p1), %vm1374_vm0, %v1373_v15  ;;  %v1256_v18 = vld [vmem:[%s1528_s29] sm:$0xff] (!%p1072_p1)  }
  0x29   : > { %s455_s9 = scalar_lea.vmem %s1691_s3, %s1104_s17  ;;  %s458_s10 = scalar_lea.vmem %s1692_s4, %s1523_s23  ;;  %v1545_v0 = vld [vmem:[%s447_s20] sm:$0xf]  ;;  %v1547_v1 = vld [vmem:[%s447_s20 + $0x4] sm:$0xf]  ;;  %v1549_v2 = vld [vmem:[%s447_s20 + $0x8] sm:$0xf] }
  0x2a   : > { %s463_s11 = scalar_lea.vmem %s1693_s5, %s1104_s17  ;;  %s466_s30 = scalar_lea.vmem %s1694_s6, %s1523_s23  ;;  %v1558_v3 = vld [vmem:[%s447_s20 + $0xc] sm:$0xf]  ;;  %v476_v4 = vld [vmem:[%s455_s9] sm:$0xf]  ;;  %v477_v5 = vld [vmem:[%s455_s9 + $0x4] sm:$0xf] }
  0x2b   : > { %s1071_s18 = sshll.u32 %s1523_s23, 2  ;;  %v478_v6 = vld [vmem:[%s455_s9 + $0x8] sm:$0xf]  ;;  %v479_v7 = vld [vmem:[%s455_s9 + $0xc] sm:$0xf]  ;;  %s437_s17 = scalar_lea.vmem [#allocation5], %s1518_s22  ;;  %v1075_v13 = vcombine.low (!%p1072_p1), %v476_v4, %v477_v5 }
  0x2c   : > { %s470_s28 = scalar_lea.vmem %s1695_s7, %s1071_s18  ;;  %v480_v8 = vld [vmem:[%s463_s11] sm:$0xf]  ;;  %v481_v9 = vld [vmem:[%s463_s11 + $0x4] sm:$0xf]  ;;  %v482_v10 = vld [vmem:[%s463_s11 + $0x8] sm:$0xf]  ;;  %v1076_v16 = vcombine.low (!%p1072_p1), %v478_v6, %v479_v7 }
  0x2d   : > { %v483_v11 = vld [vmem:[%s463_s11 + $0xc] sm:$0xf]  ;;  %v1564_v12 = vld [vmem:[%s470_s28] sm:$0xf]  ;;  %488 = sbr.rel (%p1072_p1) target bundleno = 273 (0x111), region = 60  ;;  %v1079_v14 = vcombine.low (!%p1072_p1), %v480_v8, %v481_v9  ;;  %1123 = vmatpush3.bf16.msra.mxu0 (!%p1072_p1), %v1075_v13  ;;  %s627_s11 = scalar_lea.vmem (!%p1072_p1), [#allocation3], %s1082_s16 }
  0x2e   : > { %v1080_v17 = vcombine.low (!%p1072_p1), %v482_v10, %v483_v11  ;;  %1124 = vmatprep.subr.bf16.mxu0 (!%p1072_p1), %v1373_v15  ;;  %v1073_v19 = vld [vmem:[%s458_s10] ss:$0 sm:$0xff] (!%p1072_p1)  ;;  %s622_s10 = scalar_lea.vmem (!%p1072_p1), [#allocation2], %s1082_s16 }
  0x2f   : > { %1131 = vmatpush3.bf16.msra.mxu1 (!%p1072_p1), %v1079_v14  ;;  %v1078_v21 = vld [vmem:[%s466_s30] ss:$0 sm:$0xff] (!%p1072_p1) }
  0x30   : > { %1132 = vmatprep.subr.bf16.mxu1 (!%p1072_p1), %v1373_v15 }
  0x31   : > { %1125 = vmatpush3.bf16.msra.mxu0 (!%p1072_p1), %v1076_v16 }
  0x33   : > { %1133 = vmatpush3.bf16.msra.mxu1 (!%p1072_p1), %v1080_v17 }
  0x34   : > { %1127 = vmatmul.mubr.msk.bf16.vlgmr.msra.gmra.mrb[0].mxu0 %vm515_vm1, %v1256_v18 }
  0x36   : > { %1135 = vmatmul.mubr.msk.bf16.vlgmr.msra.gmra.mrb[0].mxu1 %vm515_vm1, %v1256_v18 }
 0x107   : > { %v553_v20 = vpop.f32.mrb[0].mxu0 }
 0x108   : > { %v1128_v23 = vpop.f32.mrb[1].mxu0  ;;  %v554_v27 = vadd.f32 %v1073_v19, %v553_v20 }
 0x109   : > { %v613_v22 = vpop.f32.mrb[0].mxu1  ;;  %v556_v25 = vpop.f32.mrb[2].mxu0 }
 0x10a   : > { %v1136_v24 = vpop.f32.mrb[1].mxu1  ;;  %v614_v28 = vadd.f32 %v1078_v21, %v613_v22  ;;  %v557_v29 = vadd.f32 %v1073_v19, %v556_v25  ;;  %v1129_v31 = vpop.f32.mrb[3].mxu0 }
 0x10b   : > { %v616_v26 = vpop.f32.mrb[2].mxu1 }
 0x10c   : > { %v617_v30 = vadd.f32 %v1078_v21, %v616_v26  ;;  %v1137_v32 = vpop.f32.mrb[3].mxu1  ;;  %v620_v33 = vpack.c.bf16 %v557_v29, %v554_v27 }
 0x10e   : > { %v625_v34 = vpack.c.bf16 %v617_v30, %v614_v28  ;;  %624 = vst.msk [vmem:[%s622_s10] sm:$0xff] %vm623_vm2, %v620_v33 }
 0x110   : > { %628 = vst.msk [vmem:[%s627_s11] sm:$0xff] %vm623_vm2, %v625_v34 }
 0x111 PF: > { %v1089_v35 = vcombine.low %v1545_v0, %v1547_v1  ;;  %s1086_s19 = sshll.u32 %s1351_s13, 3  ;;  %s1084_s26 = sshll.u32 %s1347_s12, 3  ;;  %v1375_v36 = vmov 0.0   ;;  %vm1376_vm3 = vmmov 0   ;;  %vm705_vm4 = vcmask 64512  }
 0x112   : > { %1138 = vmatprep.subr.bf16.mxu0 %v1375_v36  ;;  %1142 = vmatprep.mubr.msk.bf16.mxu0 %vm1376_vm3, %v1375_v36  ;;  %s636_s30 = sshra.s32 %s1086_s19, 3  ;;  %v1090_v37 = vcombine.low %v1549_v2, %v1558_v3  ;;  %s630_s24 = scalar_lea.vmem [#allocation2], %s1084_s26  ;;  %vm660_vm5 = vcmask 261120   ;;  %v1088_v41 = vld [vmem:[%s450_s25] ss:$0 sm:$0xff]  ;;  %vm752_vm6 = vcmask 130048  }
 0x113   : > { %1139 = vmatpush3.bf16.msra.mxu0 %v1089_v35  ;;  %s1087_s18 = sshll.u32 %s636_s30, 2  ;;  %1146 = vmatprep.subr.bf16.mxu1 %v1375_v36  ;;  %s633_s23 = scalar_lea.vmem [#allocation3], %s1084_s26 }
 0x114   : > { %1140 = vmatprep.subr.bf16.mxu0 %v1375_v36  ;;  %s639_s27 = scalar_lea.vmem %s1528_s29, %s1087_s18  ;;  %1148 = vmatprep.mubr.msk.bf16.mxu1 %vm1376_vm3, %v1375_v36  ;;  %p1094_p2 = scmp.ne.s32.totalorder %s1347_s12, 0 }
 0x115   : > { %v631_v38 = vld [vmem:[%s630_s24] sm:$0xff]  ;;  %v1377_v3 = vmov (!%p1094_p2), 0.0  }
 0x116   : > { %v710_v39 = vsel %vm705_vm4, %v631_v38, 0  ;;  %v640_v40 = vld [vmem:[%s639_s27] sm:$0xf]  ;;  %812 = vst.msk [vmem:[#allocation4] sm:$0xff] (!%p1094_p2), %vm660_vm5, %v1377_v3 }
 0x117   : > { %1147 = vmatpush3.bf16.xpose.msra.mxu1 %v710_v39  ;;  %1141 = vmatpush3.bf16.msra.mxu0 %v1090_v37  ;;  %v634_v58 = vld [vmem:[%s633_s23] sm:$0xff] }
 0x118   : > { %1152 = vmatprep.subr.bf16.mxu0 %v1375_v36 }
 0x11a   : > { %1143 = vmatmul.mubr.msk.bf16.vlgmr.msra.gmra.mrb[0].mxu0 %vm660_vm5, %v640_v40 }
 0x11b   : > { %1154 = vmatprep.mubr.msk.bf16.mxu0 %vm1376_vm3, %v1375_v36  ;;  %1153 = vmatpush3.bf16.msra.mxu0 %v634_v58 }
 0x1ed   : > { %v698_v42 = vpop.f32.mrb[0].mxu0 }
 0x1ee   : > { %v699_v43 = vadd.f32 %v1088_v41, %v698_v42  ;;  %v1144_v44 = vpop.f32.mrb[1].mxu0 }
 0x1ef   : > { %v701_v45 = vpop.f32.mrb[2].mxu0 }
 0x1f0   : > { %v704_v46 = vpack.c.bf16 %v699_v43, %v699_v43  ;;  %v1145_v47 = vpop.f32.mrb[3].mxu0 }
 0x1f2   : > { %1149 = vmatmul.mubr.msk.bf16.vlgmr.msra.gmra.mrb[0].mxu1 %vm705_vm4, %v704_v46 }
 0x2c5   : > { %v746_v48 = vpop.f32.mrb[0].mxu1 }
 0x2c6   : > { %v1150_v49 = vpop.f32.mrb[1].mxu1  ;;  %v753_v50 = vsel %vm752_vm6, %v746_v48, -inf }
 0x2c7   : > { %754 = vmax.xlane.f32.xlu0 %v753_v50  ;;  %v749_v51 = vpop.f32.mrb[2].mxu1 }
 0x2c8   : > { %v1151_v52 = vpop.f32.mrb[3].mxu1 }
 0x354   : > { %v755_v53 = vpop.xlane.xlu0 %754 }
 0x355   : > { %v756_v54 = vsub.f32 %v746_v48, %v755_v53 }
 0x357   : > { %v757_v55 = vmul.f32 1.442695, %v756_v54 }
 0x359   : > { %1257 = vpow2.f32 %v757_v55 }
 0x363   : > { %v1258_v56 = vpop.eup %1257 }
 0x364   : > { %v759_v57 = vsel %vm752_vm6, %v1258_v56, 0.0 }
 0x365   : > { %760 = vadd.xlane.f32.xlu0 %v759_v57 }
 0x3f2   : > { %v761_v59 = vpop.xlane.xlu0 %760 }
 0x3f3   : > { %1259 = vrcp.f32 %v761_v59 }
 0x3fd   : > { %v1260_v60 = vpop.eup %1259 }
 0x3fe   : > { %v763_v61 = vmul.f32 %v1260_v60, %v1258_v56 }
 0x400   : > { %v764_v62 = vpack.c.bf16 %v763_v61, %v763_v61 }
 0x402   : > { %1155 = vmatmul.mubr.msk.bf16.vlgmr.msra.gmra.mrb[4].mxu0 %vm752_vm6, %v764_v62 }
 0x4d2   : > { %811 = sbr.rel (%p1094_p2) target bundleno = 1241 (0x4d9), region = 64 }
 0x4d5   : > { %v802_v63 = vpop.f32.mrb[4].mxu0 }
 0x4d6   : > { %v1156_v0 = vpop.f32.mrb[5].mxu0 }
 0x4d7   : > { %v805_v1 = vpop.f32.mrb[6].mxu0 }
 0x4d8   : > { %v1157_v2 = vpop.f32.mrb[7].mxu0 }
 0x4d9 PF: > { %1158 = vmatprep.subr.bf16.mxu1 %v1375_v36  ;;  %vm818_vm7 = vcmask 1043456   ;;  %1160 = vmatprep.mubr.msk.bf16.mxu1 %vm1376_vm3, %v1375_v36  ;;  %v814_v5 = vpack.c.bf16 %v802_v63, %v802_v63  ;;  %v813_v6 = vld [vmem:[#allocation4] sm:$0xff]  ;;  %p1096_p3 = scmp.ne.s32.totalorder %s1347_s12, 3 }
 0x4da   : > { %v820_v4 = vsel %vm818_vm7, %v1564_v12, 0  ;;  %v1097_v12 = vld [vmem:[%s1696_s8] ss:$0 sm:$0xff] (!%p1096_p3) }
 0x4db   : > { %1159 = vmatpush3.bf16.msra.mxu1 %v820_v4 }
 0x4de   : > { %1161 = vmatmul.mubr.msk.bf16.vlgmr.msra.gmra.mrb[4].mxu1 %vm705_vm4, %v814_v5 }
 0x5ae   : > { %867 = sbr.rel (%p1096_p3) target bundleno = 1471 (0x5bf), region = 68 }
 0x5b1   : > { %v856_v7 = vpop.f32.mrb[4].mxu1 }
 0x5b2   : > { %v862_v8 = vadd.f32 %v856_v7, %v813_v6  ;;  %v1162_v9 = vpop.f32.mrb[5].mxu1 }
 0x5b3   : > { %v859_v10 = vpop.f32.mrb[6].mxu1 }
 0x5b4   : > { %863 = vst.msk [vmem:[#allocation4] sm:$0xff] %vm660_vm5, %v862_v8  ;;  %v1163_v11 = vpop.f32.mrb[7].mxu1 }
 0x5bb   : > { %v868_v13 = vld [vmem:[#allocation4] sm:$0xff] }
 0x5bc   : > { %v876_v14 = vadd.f32 %v1097_v12, %v868_v13 }
 0x5be   : > { %877 = vst.msk [vmem:[%s437_s17] sm:$0xff] %vm660_vm5, %v876_v14 }
 0x5bf PF: > { %s1729_s20 = sld [smem:[#allocation9_spill]]  ;;  %s1099_s15 = sshll.u32 %s1355_s14, 1 }
 0x5c0   : > { %s890_s16 = sadd.s32 %s1351_s13, %s1099_s15  ;;  %s894_s12 = sshll.u32 %s437_s17, 4  ;;  %s1631_s12 = int_to_ptr.vmem [resolvable:$true] %s894_s12 }
 0x5c1   : > { %s1100_s10 = sshll.u32 %s890_s16, 7  ;;  %s1731_s26 = sld [smem:[#allocation21_spill]] }
 0x5c2   : > { %s1261_s27 = scalar_lea.vmem %s1631_s12, 128  ;;  %s1378_s13 = smov [#allocation5]  }
 0x5c3   : > { %p1262_p4 = scmp.ne.s32.totalorder %s1631_s12, %s1261_s27  ;;  %s1265_s14 = sshll.u32 %s1378_s13, 4  ;;  %s1266_s14 = int_to_ptr.vmem [resolvable:$false] %s1265_s14 }
 0x5c4   : > { %s1267_s22 = scalar_lea.vmem %s1266_s14, 256  ;;  %p1268_p9 = scmp.lt.s32.totalorder %s1631_s12, %s1266_s14 }
 0x5c5   : > { %s1732_s18 = sand.u32 1, %s1729_s20   ;;  %p1263_p5 = pnand %p1262_p4, %p1491_p6 }
 0x5c6   : > { %s879_s24 = scalar_lea.sflag [#allocation6], %s1732_s18  ;;  %p1269_p10 = scmp.lt.s32.totalorder %s1267_s22, %s1261_s27 }
 0x5c7   : > { %s892_s30 = scalar_lea.hbm %s1731_s26, %s1100_s10  ;;  %p1264_p8 = pneg %p1263_p5 }
 0x5c8   : > { %p1270_p11 = por %p1269_p10, %p1268_p9 }
 0x5ca   : > { %p1271_p12 = pnand %p1270_p11, %p1264_p8 }
 0x5cc   : > { %1274 = shalt.err (!%p1271_p12)
}
 0x5cd   : > { %s1275_s17 = scalar_lea.hbm %s892_s30, 128  ;;  %s1279_s23 = scalar_lea.hbm %s1731_s26, 512 }
 0x5ce   : > { %p1276_p13 = scmp.ne.s32.totalorder %s892_s30, %s1275_s17  ;;  %p1280_p2 = scmp.lt.u32.totalorder %s892_s30, %s1731_s26 }
 0x5cf   : > { %p1281_p3 = scmp.lt.u32.totalorder %s1279_s23, %s1275_s17  ;;  %p1283_p5 = scmp.lt.u32.totalorder %s1275_s17, %s892_s30 }
 0x5d0   : > { %p1277_p0 = pnand %p1276_p13, %p1491_p6 }
 0x5d1   : > { %p1282_p4 = por %p1281_p3, %p1280_p2 }
 0x5d2   : > { %p1278_p1 = pneg %p1277_p0 }
 0x5d3   : > { %p1284_p9 = por %p1283_p5, %p1282_p4 }
 0x5d5   : > { %p1285_p8 = pnand %p1284_p9, %p1278_p1 }
 0x5d7   : > { %1288 = shalt.err (!%p1285_p8)
}
 0x5d8   : > { %1164 = dma.vmem_to_hbm [thread:$0]  (%p1491_p6), %s1631_s12, 128, %s892_s30, %s879_s24  }
 0x5d9 PF: > { %s1733_s20 = sld [smem:[#allocation14_spill]]  ;;  %s1734_s15 = sld [smem:[#allocation8_spill]] }
 0x5df   : > { %p1170_p10 = scmp.ge.s32.totalorder %s1733_s20, 2  ;;  %s906_s10 = sand.u32 1, %s1734_s15  }
 0x5e0   : > { %s907_s11 = scalar_lea.sflag [#allocation6], %s906_s10 }
 0x5e1   : > { %p1167_p11 = pnand %p1170_p10, %p1498_p7 }
 0x5e3   : > { %1330 = dma.done.wait (!%p1167_p11), %s907_s11, 128  }
 0x5e4   : > { %1332 = vsyncadd (!%p1167_p11), %s907_s11, 4294967168  ;;  %s22_s18 = sadd.s32 1, %s1733_s20   ;;  %s1736_s30 = sld [smem:[#allocation9_spill]] }
 0x5e5   : > { %p19_p12 = scmp.ge.s32.totalorder %s22_s18, 18   ;;  %s1737_s10 = sld [smem:[#allocation10_spill]] }
 0x5e6   : > { %s1738_s11 = sld [smem:[#allocation20_spill]]  ;;  %s1739_s12 = sld [smem:[#allocation11_spill]] }
 0x5e7   : > { %s1740_s13 = sld [smem:[#allocation12_spill]]  ;;  %s1741_s14 = sld [smem:[#allocation13_spill]] }
 0x5e8   : > { %s1742_s15 = sld [smem:[#allocation15_spill]]  ;;  %s1743_s16 = sld [smem:[#allocation17_spill]] }
 0x5e9   : > { %s1744_s17 = sld [smem:[#allocation19_spill]]  ;;  %21 = sbr.rel (!%p19_p12) target bundleno = 8 (0x8), region = 129 }
 0x5f0   :  { %912 = vsyncpa [#allocation6], 1 }
 0x5f1   :  { %914 = vsyncpa [#allocation6 + $0x1], 1 }

</bundles_post_ra>
